<compile_context>
chip_gen: v5e
topology: v5e:2x2
jax: 0.10.0
libtpu: 0.0.40
codegen_flags: <defaults>
</compile_context>

<pallas_src>
import functools

import jax
import jax.numpy as jnp
from jax.experimental import pallas as pl
from jax.experimental.pallas import tpu as pltpu


def _round_up(x, m):
    return ((x + m - 1) // m) * m


def _vmem_capacity_bytes():
    """Physical per-core VMEM; fall back to the smallest current gen (v7x, 64 MiB)."""
    try:
        return int(pltpu.get_tpu_info().vmem_capacity_bytes)
    except Exception:
        return 64 * 1024 * 1024


def _make_fcnet_kernel(num_layers, compute_dtype):
    """Fused kernel.  refs = (x, w0, b0, w1, b1, ..., out).

    Weights / biases are whole-array VMEM residents (single copy); x / out are
    batch tiles.  The weight_norm scale is pre-folded into w, so each layer is
    relu(h @ w + b): one MXU bf16->f32 matmul plus a minimal f32 epilogue.
    """

    def kernel(*refs):
        x_ref = refs[0]
        o_ref = refs[-1]
        layer_refs = refs[1:-1]

        h = x_ref[...]  # bf16 activation tile, stays resident across layers
        for i in range(num_layers):  # unrolled at trace time
            w_ref = layer_refs[2 * i]      # [in_dim, out_dim] bf16 (scale folded in)
            b_ref = layer_refs[2 * i + 1]  # [1, out_dim] f32
            y = jnp.dot(h, w_ref[...], preferred_element_type=jnp.float32)
            y = jnp.maximum(y + b_ref[...], 0.0)
            h = y.astype(compute_dtype) if i + 1 < num_layers else y
        o_ref[...] = h.astype(o_ref.dtype)

    return kernel


def prepare_fcnet_params(params, *, compute_dtype=jnp.bfloat16):
    """One-time prep: fold g/||V||_F into a pre-transposed bf16 effective weight.

    Doing this once (not per forward call) removes the per-call f32 weight reads
    for the Frobenius norm and the f32->bf16 cast of every weight.
    """
    prepared = []
    for p in params:
        v_t = p["v_t"].astype(jnp.float32)                      # [in, out]
        scale = p["g"].astype(jnp.float32) * jax.lax.rsqrt(jnp.sum(v_t * v_t))
        prepared.append({
            "w": (v_t * scale).astype(compute_dtype),            # [in, out] bf16
            "b": p["b"].reshape(1, -1).astype(jnp.float32),      # [1, out]  f32
        })
    return prepared


def _fixed_bytes(group):
    return sum(int(p["w"].size) * p["w"].dtype.itemsize
               + int(p["b"].size) * p["b"].dtype.itemsize for p in group)


def _group_layers(prepared, weight_budget):
    """Greedily pack consecutive layers whose resident weights fit the budget."""
    groups, cur, cur_bytes = [], [], 0
    for p in prepared:
        nb = (int(p["w"].size) * p["w"].dtype.itemsize
              + int(p["b"].size) * p["b"].dtype.itemsize)
        if cur and cur_bytes + nb > weight_budget:
            groups.append(cur)
            cur, cur_bytes = [], 0
        # TODO(synk): if a single layer's weight alone exceeds the budget, stream it
        # in N-tiles with an inner pltpu.emit_pipeline instead of holding it whole.
        cur.append(p)
        cur_bytes += nb
    if cur:
        groups.append(cur)
    return groups


def fcnet_forward(prepared, x, *, compute_dtype=jnp.bfloat16):
    """Fused FCNet forward: per layer relu(x @ w_eff + b), w_eff = g * V^T / ||V||_F."""
    out_dtype = x.dtype
    out_isz = jnp.dtype(out_dtype).itemsize
    c_isz = jnp.dtype(compute_dtype).itemsize
    M = x.shape[0]

    dims = [prepared[0]["w"].shape[0]] + [p["w"].shape[1] for p in prepared]
    max_dim = max(dims)

    cap = _vmem_capacity_bytes()
    budget = int(cap * 0.75)  # leave headroom for spills / internal scratch
    groups = _group_layers(prepared, max(budget - (8 << 20), 4 << 20))

    # Worst-case resident weight bytes per group + per-batch-row working bytes.
    max_fixed = max(_fixed_bytes(g) for g in groups)
    per_row = (2 * dims[0] * c_isz            # x tile, double-buffered
               + 2 * dims[-1] * out_isz       # out tile, double-buffered
               + max_dim * 4 + max_dim * c_isz)  # f32 intermediate + bf16 recast

    # Batch tile: multiple of 16 (bf16 packs 16 rows per sublane group), as large
    # as the remaining VMEM allows, capped at 1024.
    m_pad = _round_up(M, 16)
    tm_cap = (budget - max_fixed) // max(per_row, 1)
    tm_cap = min(max((tm_cap // 16) * 16, 16), 1024)
    if m_pad <= tm_cap:
        # Whole batch fits one tile.  If it's big enough, split in two so the
        # "parallel" batch axis can be sharded across v7x's two TensorCores.
        tm = m_pad // 2 if m_pad >= 256 else m_pad
    else:
        tm = (tm_cap // 128) * 128 if tm_cap >= 128 else tm_cap
        m_pad = _round_up(m_pad, tm)

    h = x.astype(compute_dtype)
    if m_pad != M:
        h = jnp.pad(h, ((0, m_pad - M), (0, 0)))

    grid = (m_pad // tm,)
    for gi, group in enumerate(groups):
        last = gi == len(groups) - 1
        g_out_dtype = out_dtype if last else compute_dtype  # bf16 HBM hop between groups
        g_out_isz = jnp.dtype(g_out_dtype).itemsize
        din, dout = group[0]["w"].shape[0], group[-1]["w"].shape[1]
        gmax = max([din] + [p["w"].shape[1] for p in group])
        fixed = _fixed_bytes(group)

        # VMEM limit computed from this call's actual footprint (+slack),
        # never below the 32 MiB-ish scoped defaults, never above ~85% of physical.
        need = (fixed
                + 2 * tm * din * int(h.dtype.itemsize)
                + 2 * tm * dout * g_out_isz
                + tm * gmax * (4 + c_isz)
                + (2 << 20))
        vmem_limit = int(min(int(cap * 0.85), max(need, 32 << 20)))

        flops = 2 * m_pad * sum(p["w"].shape[0] * p["w"].shape[1] for p in group)
        bytes_accessed = (fixed
                          + m_pad * din * int(h.dtype.itemsize)
                          + m_pad * dout * g_out_isz)

        args = [h]
        in_specs = [pl.BlockSpec((tm, din), lambda i: (i, 0))]
        for p in group:
            # Whole weight/bias resident in VMEM: DMA'd once, single copy
            # (no 2x pipeline buffers for constant-index blocks).
            args.append(p["w"])
            in_specs.append(pl.BlockSpec(memory_space=pltpu.MemorySpace.VMEM))
            args.append(p["b"])
            in_specs.append(pl.BlockSpec(memory_space=pltpu.MemorySpace.VMEM))

        h = pl.pallas_call(
            _make_fcnet_kernel(len(group), compute_dtype),
            out_shape=jax.ShapeDtypeStruct((m_pad, dout), g_out_dtype),
            grid=grid,
            in_specs=in_specs,
            out_specs=pl.BlockSpec((tm, dout), lambda i: (i, 0)),
            compiler_params=pltpu.CompilerParams(
                dimension_semantics=("parallel",),
                vmem_limit_bytes=vmem_limit,
            ),
            cost_estimate=pl.CostEstimate(
                flops=int(flops), transcendentals=0,
                bytes_accessed=int(bytes_accessed)),
        )(*args)

    return h[:M]


def init_fcnet_params(key, dims, dtype=jnp.float32):
    """Deterministic synthetic params mirroring weight_norm(nn.Linear, dim=None).

    v_t is stored pre-transposed as [in_dim, out_dim] (same Frobenius norm as torch's v).
    """
    params = []
    for i in range(len(dims) - 1):
        in_dim, out_dim = dims[i], dims[i + 1]
        key, kv, kb, kg = jax.random.split(key, 4)
        bound = 1.0 / jnp.sqrt(in_dim)
        v_t = jax.random.uniform(kv, (in_dim, out_dim), dtype, -bound, bound)
        b = jax.random.uniform(kb, (out_dim,), dtype, -bound, bound)
        g = jax.random.uniform(kg, (), dtype, 0.5, 1.5)  # scalar g (dim=None)
        params.append({"v_t": v_t, "g": g, "b": b})
    return params


def fcnet_reference(params, x):
    """Pure-JAX f32 reference: weight_norm(dim=None) Linear -> ReLU per layer."""
    for p in params:
        v_t, g, b = p["v_t"], p["g"], p["b"]
        w_eff = g * v_t / jnp.sqrt(jnp.sum(v_t.astype(jnp.float32) ** 2))
        x = jnp.maximum(x @ w_eff.astype(jnp.float32) + b, 0.0)
    return x


if __name__ == "__main__":
    key = jax.random.PRNGKey(0)
    dims = [128, 256, 128]   # FCNet([128, 256, 128]) -> 2 (weight_norm Linear + ReLU) layers
    batch = 16

    kx, kp = jax.random.split(key)
    x = jax.random.normal(kx, (batch, dims[0]), jnp.float32)
    raw_params = init_fcnet_params(kp, dims)

    # One-time weight prep (fold g/||V||_F, cast to bf16) -- NOT on the per-call path.
    prepared = prepare_fcnet_params(raw_params)

    fwd = jax.jit(functools.partial(fcnet_forward, prepared))
    y = jax.block_until_ready(fwd(x))
    y_ref = fcnet_reference(raw_params, x)

    assert y.shape == (batch, dims[-1]), y.shape
    # bf16 MXU path -> compare against the f32 reference with a loosened tolerance.
    max_err = float(jnp.max(jnp.abs(y - y_ref)))
    assert jnp.allclose(y, y_ref, atol=1e-2, rtol=1e-2), max_err
    print("KERNEL_OK")
</pallas_src>

<mosaic_0001>
module attributes {stable_mosaic.version = 11 : i64} {
  func.func @kernel(%arg0: i32, %arg1: memref<16x128xbf16, #tpu.memory_space<vmem>>, %arg2: memref<128x256xbf16, #tpu.memory_space<vmem>>, %arg3: memref<1x256xf32, #tpu.memory_space<vmem>>, %arg4: memref<256x128xbf16, #tpu.memory_space<vmem>>, %arg5: memref<1x128xf32, #tpu.memory_space<vmem>>, %arg6: memref<16x128xf32, #tpu.memory_space<vmem>>) attributes {dimension_semantics = [#tpu.dimension_semantics<parallel>], iteration_bounds = array<i64: 1>, scalar_prefetch = 0 : i64, scratch_operands = 0 : i64, tpu.core_type = #tpu.core_type<tc>, window_params = [{transform_indices = @transform_0, window_bounds = array<i64: 16, 128>}, {pipeline_mode = #tpu.pipeline_mode<synchronous>, transform_indices = @transform_1, window_bounds = array<i64: 128, 256>}, {pipeline_mode = #tpu.pipeline_mode<synchronous>, transform_indices = @transform_2, window_bounds = array<i64: 1, 256>}, {pipeline_mode = #tpu.pipeline_mode<synchronous>, transform_indices = @transform_3, window_bounds = array<i64: 256, 128>}, {pipeline_mode = #tpu.pipeline_mode<synchronous>, transform_indices = @transform_4, window_bounds = array<i64: 1, 128>}, {transform_indices = @transform_5, window_bounds = array<i64: 16, 128>}]} {
    %c0 = arith.constant 0 : index
    %c0_0 = arith.constant 0 : index
    %0 = vector.load %arg1[%c0, %c0_0] : memref<16x128xbf16, #tpu.memory_space<vmem>>, vector<16x128xbf16>
    %c0_1 = arith.constant 0 : index
    %c0_2 = arith.constant 0 : index
    %1 = vector.load %arg2[%c0_1, %c0_2] : memref<128x256xbf16, #tpu.memory_space<vmem>>, vector<128x256xbf16>
    %cst = arith.constant dense<0.000000e+00> : vector<16x256xf32>
    %2 = tpu.matmul %0, %1, %cst {dimension_numbers = #tpu.dot_dimension_numbers<[1], [0], [0], [1], [0, 0, 1, 1], [], []>} : vector<16x128xbf16>, vector<128x256xbf16>, vector<16x256xf32> -> vector<16x256xf32>
    %c0_3 = arith.constant 0 : index
    %c0_4 = arith.constant 0 : index
    %3 = vector.load %arg3[%c0_3, %c0_4] : memref<1x256xf32, #tpu.memory_space<vmem>>, vector<1x256xf32>
    %4 = vector.broadcast %3 : vector<1x256xf32> to vector<16x256xf32>
    %5 = arith.addf %2, %4 : vector<16x256xf32>
    %cst_5 = arith.constant 0.000000e+00 : f32
    %6 = vector.broadcast %cst_5 : f32 to vector<16x256xf32>
    %7 = arith.maximumf %5, %6 : vector<16x256xf32>
    %8 = arith.truncf %7 : vector<16x256xf32> to vector<16x256xbf16>
    %c0_6 = arith.constant 0 : index
    %c0_7 = arith.constant 0 : index
    %9 = vector.load %arg4[%c0_6, %c0_7] : memref<256x128xbf16, #tpu.memory_space<vmem>>, vector<256x128xbf16>
    %cst_8 = arith.constant dense<0.000000e+00> : vector<16x128xf32>
    %10 = tpu.matmul %8, %9, %cst_8 {dimension_numbers = #tpu.dot_dimension_numbers<[1], [0], [0], [1], [0, 0, 1, 1], [], []>} : vector<16x256xbf16>, vector<256x128xbf16>, vector<16x128xf32> -> vector<16x128xf32>
    %c0_9 = arith.constant 0 : index
    %c0_10 = arith.constant 0 : index
    %11 = vector.load %arg5[%c0_9, %c0_10] : memref<1x128xf32, #tpu.memory_space<vmem>>, vector<1x128xf32>
    %12 = vector.broadcast %11 : vector<1x128xf32> to vector<16x128xf32>
    %13 = arith.addf %10, %12 : vector<16x128xf32>
    %cst_11 = arith.constant 0.000000e+00 : f32
    %14 = vector.broadcast %cst_11 : f32 to vector<16x128xf32>
    %15 = arith.maximumf %13, %14 : vector<16x128xf32>
    %c0_12 = arith.constant 0 : index
    %c0_13 = arith.constant 0 : index
    %16 = vector.load %arg6[%c0_12, %c0_13] : memref<16x128xf32, #tpu.memory_space<vmem>>, vector<16x128xf32>
    tpu.vector_store %arg6[%c0_12, %c0_13], %15 {strides = array<i32>} : memref<16x128xf32, #tpu.memory_space<vmem>>, vector<16x128xf32>,
    return
  }
  func.func @transform_0(%arg0: i32) -> (i32, i32) {
    %c0_i32 = arith.constant 0 : i32
    %c0_i32_0 = arith.constant 0 : i32
    return %arg0, %c0_i32 : i32, i32
  }
  func.func @transform_1(%arg0: i32) -> (i32, i32) {
    %c0_i32 = arith.constant 0 : i32
    %c0_i32_0 = arith.constant 0 : i32
    %c0_i32_1 = arith.constant 0 : i32
    return %c0_i32, %c0_i32_0 : i32, i32
  }
  func.func @transform_2(%arg0: i32) -> (i32, i32) {
    %c0_i32 = arith.constant 0 : i32
    %c0_i32_0 = arith.constant 0 : i32
    %c0_i32_1 = arith.constant 0 : i32
    return %c0_i32, %c0_i32_0 : i32, i32
  }
  func.func @transform_3(%arg0: i32) -> (i32, i32) {
    %c0_i32 = arith.constant 0 : i32
    %c0_i32_0 = arith.constant 0 : i32
    %c0_i32_1 = arith.constant 0 : i32
    return %c0_i32, %c0_i32_0 : i32, i32
  }
  func.func @transform_4(%arg0: i32) -> (i32, i32) {
    %c0_i32 = arith.constant 0 : i32
    %c0_i32_0 = arith.constant 0 : i32
    %c0_i32_1 = arith.constant 0 : i32
    return %c0_i32, %c0_i32_0 : i32, i32
  }
  func.func @transform_5(%arg0: i32) -> (i32, i32) {
    %c0_i32 = arith.constant 0 : i32
    %c0_i32_0 = arith.constant 0 : i32
    return %arg0, %c0_i32 : i32, i32
  }
}

</mosaic_0001>

<bundles_post_ra>
// kernel: fcnet_forward.1
= control target key start
LH: loop header
LB: loop body
LE: loop exit
PB: predicated region body
PF: predicated region fallthrough
CT: control target
= control target key end

     0   :  { %10 = vsyncpa [#allocation3], 0  ;;  %s693_s0 = inlined_call_operand.vmem [shape: bf16[16,128], index: 0, kind: input, shape index: {}]   ;;  %s694_s1 = inlined_call_operand.hbm [shape: bf16[128,256], index: 1, kind: input, shape index: {}]   ;;  %s695_s2 = inlined_call_operand.vmem [shape: f32[1,256], index: 2, kind: input, shape index: {}]   ;;  %s696_s3 = inlined_call_operand.hbm [shape: bf16[256,128], index: 3, kind: input, shape index: {}]   ;;  %s697_s4 = inlined_call_operand.vmem [shape: f32[1,128], index: 4, kind: input, shape index: {}]   ;;  %s698_s5 = inlined_call_operand.hbm [shape: f32[16,128], index: 5, kind: output, shape index: {}]  }
   0x1   :  { %11 = vsyncpa [#allocation6], 0 }
   0x2   :  { %12 = vsyncpa [#allocation4], 0  ;;  %s19_s20 = sshll.u32 %s694_s1, 4  ;;  %s632_s21 = smov [#allocation2]   ;;  %s20_s20 = int_to_ptr.hbm [resolvable:$true] %s19_s20 }
   0x3   :  { %s21_s22 = sshll.u32 %s632_s21, 4  ;;  %s34_s25 = sshll.u32 %s696_s3, 4  ;;  %s22_s22 = int_to_ptr.vmem [resolvable:$true] %s21_s22  ;;  %s35_s25 = int_to_ptr.hbm [resolvable:$true] %s34_s25 }
   0x4   :  { %s633_s26 = smov 128   ;;  %s634_s27 = smov 8  }
   0x5   :  { %27 = dma.hbm_to_vmem [thread:$0]  %s20_s20, 2048, %s22_s22, [#allocation3], %s633_s26, %s633_s26, %s634_s27  }
   0x6   :  { %s635_s28 = smov [#allocation5]   ;;  %s636_s30 = smov 64  }
   0x7   :  { %s36_s29 = sshll.u32 %s635_s28, 4  ;;  %s637_s1 = smov 4   ;;  %s37_s29 = int_to_ptr.vmem [resolvable:$true] %s36_s29 }
   0x8   :  { %42 = dma.hbm_to_vmem [thread:$0]  %s35_s25, 2048, %s37_s29, [#allocation6], %s636_s30, %s636_s30, %s637_s1  }
   0x9   :  { %626 = dma.done.wait [#allocation3], 2048  }
   0xa   :  { %627 = vsyncadd [#allocation3], 4294965248 }
   0xb   :  { %628 = dma.done.wait [#allocation6], 2048  }
   0xc   :  { %629 = vsyncadd [#allocation6], 4294965248  ;;  %v443_v0 = vld [vmem:[#allocation2 + $0x70] sm:$0xf]  ;;  %v529_v1 = vld [vmem:[#allocation2 + $0x74] sm:$0xf0] }
   0xd   :  { %v528_v2 = vld [vmem:[#allocation2 + $0x74] sm:$0xf]  ;;  %v444_v3 = vor.u32 %v529_v1, %v443_v0  ;;  %v445_v4 = vld [vmem:[#allocation2 + $0x78] sm:$0xf0]  ;;  %v435_v5 = vld [vmem:[#allocation2 + $0x60] sm:$0xf] }
   0xe   :  { %v527_v6 = vld [vmem:[#allocation2 + $0x64] sm:$0xf0]  ;;  %v448_v7 = vor.u32 %v528_v2, %v445_v4  ;;  %v526_v8 = vld [vmem:[#allocation2 + $0x64] sm:$0xf]  ;;  %v437_v9 = vld [vmem:[#allocation2 + $0x68] sm:$0xf0] }
   0xf   :  { %163 = vmatpush.bf16.msra.mxu0 %v444_v3  ;;  %v436_v10 = vor.u32 %v527_v6, %v435_v5  ;;  %v440_v11 = vor.u32 %v526_v8, %v437_v9  ;;  %v427_v12 = vld [vmem:[#allocation2 + $0x50] sm:$0xf]  ;;  %v525_v13 = vld [vmem:[#allocation2 + $0x54] sm:$0xf0]  ;;  %v524_v14 = vld [vmem:[#allocation2 + $0x54] sm:$0xf] }
  0x10   :  { %177 = vmatpush.bf16.msra.mxu1 %v448_v7  ;;  %v429_v15 = vld [vmem:[#allocation2 + $0x58] sm:$0xf0]  ;;  %v428_v16 = vor.u32 %v525_v13, %v427_v12  ;;  %v419_v18 = vld [vmem:[#allocation2 + $0x40] sm:$0xf]  ;;  %v523_v19 = vld [vmem:[#allocation2 + $0x44] sm:$0xf0] }
  0x11   :  { %v432_v17 = vor.u32 %v524_v14, %v429_v15  ;;  %v522_v20 = vld [vmem:[#allocation2 + $0x44] sm:$0xf]  ;;  %v421_v21 = vld [vmem:[#allocation2 + $0x48] sm:$0xf0]  ;;  %v420_v22 = vor.u32 %v523_v19, %v419_v18  ;;  %v537_v23 = vld [vmem:[#allocation5 + $0x38] sm:$0xff]  ;;  %s638_s9 = smov [#allocation7]  }
  0x12   :  { %v545_v24 = vld [vmem:[#allocation5 + $0x78] sm:$0xff]  ;;  %v424_v25 = vor.u32 %v522_v20, %v421_v21  ;;  %v411_v26 = vld [vmem:[#allocation2 + $0x30] sm:$0xf]  ;;  %v520_v28 = vld [vmem:[#allocation2 + $0x34] sm:$0xf]  ;;  %329 = vmatpush.bf16.msra.mxu2 %v537_v23  ;;  %s365_s10 = sshll.u32 %s638_s9, 4  ;;  %s366_s10 = int_to_ptr.vmem [resolvable:$true] %s365_s10 }
  0x13   :  { %164 = vmatpush.bf16.msra.mxu0 %v436_v10  ;;  %v521_v27 = vld [vmem:[#allocation2 + $0x34] sm:$0xf0]  ;;  %v413_v29 = vld [vmem:[#allocation2 + $0x38] sm:$0xf0]  ;;  %343 = vmatpush.bf16.msra.mxu3 %v545_v24  ;;  %v536_v30 = vld [vmem:[#allocation5 + $0x30] sm:$0xff]  ;;  %s367_s13 = sshll.u32 %s698_s5, 4  ;;  %s368_s13 = int_to_ptr.hbm [resolvable:$true] %s367_s13 }
  0x14   :  { %178 = vmatpush.bf16.msra.mxu1 %v440_v11  ;;  %v544_v31 = vld [vmem:[#allocation5 + $0x70] sm:$0xff]  ;;  %v412_v32 = vor.u32 %v521_v27, %v411_v26  ;;  %v416_v33 = vor.u32 %v520_v28, %v413_v29  ;;  %v403_v34 = vld [vmem:[#allocation2 + $0x20] sm:$0xf]  ;;  %v519_v35 = vld [vmem:[#allocation2 + $0x24] sm:$0xf0] }
  0x15   :  { %v518_v36 = vld [vmem:[#allocation2 + $0x24] sm:$0xf]  ;;  %v405_v37 = vld [vmem:[#allocation2 + $0x28] sm:$0xf0]  ;;  %v404_v40 = vor.u32 %v519_v35, %v403_v34  ;;  %v395_v42 = vld [vmem:[#allocation2 + $0x10] sm:$0xf] }
  0x16   :  { %330 = vmatpush.bf16.msra.mxu2 %v536_v30  ;;  %v535_v38 = vld [vmem:[#allocation5 + $0x28] sm:$0xff]  ;;  %v408_v41 = vor.u32 %v518_v36, %v405_v37  ;;  %v517_v43 = vld [vmem:[#allocation2 + $0x14] sm:$0xf0]  ;;  %v516_v44 = vld [vmem:[#allocation2 + $0x14] sm:$0xf] }
  0x17   :  { %165 = vmatpush.bf16.msra.mxu0 %v428_v16  ;;  %344 = vmatpush.bf16.msra.mxu3 %v544_v31  ;;  %v543_v39 = vld [vmem:[#allocation5 + $0x68] sm:$0xff]  ;;  %v397_v45 = vld [vmem:[#allocation2 + $0x18] sm:$0xf0]  ;;  %v534_v46 = vld [vmem:[#allocation5 + $0x20] sm:$0xff]  ;;  %v396_v48 = vor.u32 %v517_v43, %v395_v42 }
  0x18   :  { %179 = vmatpush.bf16.msra.mxu1 %v432_v17  ;;  %v542_v47 = vld [vmem:[#allocation5 + $0x60] sm:$0xff]  ;;  %v400_v49 = vor.u32 %v516_v44, %v397_v45  ;;  %v515_v51 = vld [vmem:[#allocation2 + $0x4] sm:$0xf0]  ;;  %v389_v53 = vld [vmem:[#allocation2 + $0x8] sm:$0xf0] }
  0x19   :  { %v387_v50 = vld [vmem:[#allocation2] sm:$0xf]  ;;  %v514_v52 = vld [vmem:[#allocation2 + $0x4] sm:$0xf]  ;;  %v533_v57 = vld [vmem:[#allocation5 + $0x18] sm:$0xff] }
  0x1a   :  { %331 = vmatpush.bf16.msra.mxu2 %v535_v38  ;;  %v388_v54 = vor.u32 %v515_v51, %v387_v50  ;;  %v392_v55 = vor.u32 %v514_v52, %v389_v53  ;;  %v513_v56 = vld [vmem:[%s693_s0] sm:$0xff]  ;;  %v541_v58 = vld [vmem:[#allocation5 + $0x58] sm:$0xff]  ;;  %v532_v59 = vld [vmem:[#allocation5 + $0x10] sm:$0xff] }
  0x1b   :  { %166 = vmatpush.bf16.msra.mxu0 %v420_v22  ;;  %345 = vmatpush.bf16.msra.mxu3 %v543_v39  ;;  %v540_v60 = vld [vmem:[#allocation5 + $0x50] sm:$0xff]  ;;  %v531_v61 = vld [vmem:[#allocation5 + $0x8] sm:$0xff]  ;;  %v530_v63 = vld [vmem:[#allocation5] sm:$0xff] }
  0x1c   :  { %180 = vmatpush.bf16.msra.mxu1 %v424_v25  ;;  %v539_v62 = vld [vmem:[#allocation5 + $0x48] sm:$0xff]  ;;  %v538_v0 = vld [vmem:[#allocation5 + $0x40] sm:$0xff] }
  0x1d   :  { %v71_v1 = vld [vmem:[%s695_s2] sm:$0x3] }
  0x1e   :  { %332 = vmatpush.bf16.msra.mxu2 %v534_v46  ;;  %v73_v4 = vperm.slane %v71_v1, 0  ;;  %v74_v5 = vperm.slane %v71_v1, 1  ;;  %v553_v18 = vld [vmem:[%s697_s4] ss:$0 sm:$0xff] }
  0x1f   :  { %167 = vmatpush.bf16.msra.mxu0 %v412_v32  ;;  %346 = vmatpush.bf16.msra.mxu3 %v542_v47 }
  0x20   :  { %181 = vmatpush.bf16.msra.mxu1 %v416_v33 }
  0x22   :  { %333 = vmatpush.bf16.msra.mxu2 %v533_v57 }
  0x23   :  { %168 = vmatpush.bf16.msra.mxu0 %v404_v40  ;;  %347 = vmatpush.bf16.msra.mxu3 %v541_v58 }
  0x24   :  { %182 = vmatpush.bf16.msra.mxu1 %v408_v41 }
  0x26   :  { %334 = vmatpush.bf16.msra.mxu2 %v532_v59 }
  0x27   :  { %169 = vmatpush.bf16.msra.mxu0 %v396_v48  ;;  %348 = vmatpush.bf16.msra.mxu3 %v540_v60 }
  0x28   :  { %183 = vmatpush.bf16.msra.mxu1 %v400_v49 }
  0x2a   :  { %335 = vmatpush.bf16.msra.mxu2 %v531_v61 }
  0x2b   :  { %170 = vmatpush.bf16.msra.mxu0 %v388_v54  ;;  %349 = vmatpush.bf16.msra.mxu3 %v539_v62 }
  0x2c   :  { %184 = vmatpush.bf16.msra.mxu1 %v392_v55 }
  0x2e   :  { %171 = vmatmul.bf16.vlgmr.msra.gmra.mxu0 %v513_v56  ;;  %336 = vmatpush.bf16.msra.mxu2 %v530_v63 }
  0x2f   :  { %185 = vmatmul.bf16.vlgmr.msra.gmra.mxu1 %v513_v56  ;;  %350 = vmatpush.bf16.msra.mxu3 %v538_v0 }
  0xab   :  { %v172_v2 = vpop.f32.mrf.mxu0 }
  0xac   :  { %v186_v3 = vpop.f32.mrf.mxu1  ;;  %v173_v6 = vadd.f32 %v172_v2, %v73_v4 }
  0xad   :  { %v187_v7 = vadd.f32 %v186_v3, %v74_v5 }
  0xae   :  { %v191_v12 = vmax.f32 %v173_v6, 0.0 }
  0xaf   :  { %v192_v14 = vmax.f32 %v187_v7, 0.0 }
  0xb3   :  { %v174_v8 = vpop.f32.mrf.mxu0 }
  0xb4   :  { %v175_v9 = vadd.f32 %v174_v8, %v73_v4  ;;  %v188_v10 = vpop.f32.mrf.mxu1 }
  0xb5   :  { %v189_v11 = vadd.f32 %v188_v10, %v74_v5 }
  0xb6   :  { %v193_v13 = vmax.f32 %v175_v9, 0.0 }
  0xb7   :  { %v194_v15 = vmax.f32 %v189_v11, 0.0 }
  0xb8   :  { %v195_v16 = vpack.c.bf16 %v193_v13, %v191_v12 }
  0xb9   :  { %v196_v17 = vpack.c.bf16 %v194_v15, %v192_v14 }
  0xba   :  { %337 = vmatmul.bf16.vlgmr.msra.gmra.mxu2 %v195_v16 }
  0xbb   :  { %351 = vmatmul.bf16.vlgmr.msra.gmra.mxu3 %v196_v17 }
 0x13d   :  { %v338_v19 = vpop.f32.mrf.mxu2 }
 0x13e   :  { %v339_v20 = vadd.f32 %v553_v18, %v338_v19  ;;  %v352_v21 = vpop.f32.mrf.mxu3 }
 0x140   :  { %v353_v22 = vadd.f32 %v352_v21, %v339_v20 }
 0x142   :  { %v357_v23 = vmax.f32 %v353_v22, 0.0 }
 0x144   :  { %359 = vst [vmem:[#allocation7] sm:$0xff] %v357_v23 }
 0x145   :  { %v340_v24 = vpop.f32.mrf.mxu2 }
 0x146   :  { %v341_v25 = vadd.f32 %v553_v18, %v340_v24  ;;  %v354_v26 = vpop.f32.mrf.mxu3 }
 0x148   :  { %v355_v27 = vadd.f32 %v354_v26, %v341_v25 }
 0x14a   :  { %v358_v28 = vmax.f32 %v355_v27, 0.0 }
 0x14c   :  { %360 = vst [vmem:[#allocation7 + $0x8] sm:$0xff] %v358_v28 }
 0x14d   :  { %373 = dma.vmem_to_hbm [thread:$0]  %s366_s10, 256, %s368_s13, [#allocation4], %s633_s26, %s633_s26, %s634_s27  }
 0x14e   :  { %630 = dma.done.wait [#allocation4], 256  }
 0x14f   :  { %631 = vsyncadd [#allocation4], 4294967040 }
 0x150   :  { %378 = vsyncpa [#allocation3], 1 }
 0x151   :  { %379 = vsyncpa [#allocation6], 1 }
 0x152   :  { %380 = vsyncpa [#allocation4], 1 }

</bundles_post_ra>
